<compile_context>
chip_gen: v7x
topology: tpu7x:2x2x1
jax: 0.10.0
libtpu: 0.0.40
codegen_flags: <defaults>
</compile_context>

<pallas_src>
import functools

import jax
import jax.numpy as jnp
from jax.experimental import pallas as pl
from jax.experimental.pallas import tpu as pltpu


# ----------------------------------------------------------------------------
# Kernel
# ----------------------------------------------------------------------------

def _leaky_relu(v, slope=0.1):
    # LeakyReLU(0.1, inplace=True) from the reference module (slope matters, inplace doesn't).
    return jnp.where(v >= 0, v, slope * v)


def _sft_kernel(x_ref, inter_ref, w1_ref, wg2_ref, wb2_ref, o_ref, *,
                c_out, compute_dtype):
    """One (batch, spatial-tile) block of SFT:  out = x * gamma(inter) + beta(inter).

    Shapes (channels on sublanes, spatial on lanes):
      x_ref     : (Cout, T)
      inter_ref : (Cin,  T)
      w1_ref    : (2*Cout, Cin)   -- [wg1 ; wb1] stacked along rows
      wg2_ref   : (Cout, Cout)
      wb2_ref   : (Cout, Cout)
      o_ref     : (Cout, T)
    """
    inter = inter_ref[...].astype(compute_dtype)                    # (Cin, T)
    # Stage 1: both branches in one MXU dot; output (2*Cout, T) is lane dense.
    h = jnp.dot(w1_ref[...], inter,
                preferred_element_type=jnp.float32)                 # (2*Cout, T) f32
    h = _leaky_relu(h)                                              # f32 on VPU
    hc = h.astype(compute_dtype)
    # Stage 2: one dot per branch (avoids a zero-padded block-diagonal weight).
    gamma = jnp.dot(wg2_ref[...], hc[:c_out, :],
                    preferred_element_type=jnp.float32)             # (Cout, T) f32
    beta = jnp.dot(wb2_ref[...], hc[c_out:, :],
                   preferred_element_type=jnp.float32)              # (Cout, T) f32
    # Fused SFT modulation epilogue in f32, stored in the caller's dtype.
    x = x_ref[...].astype(jnp.float32)
    o_ref[...] = (x * gamma + beta).astype(o_ref.dtype)


# ----------------------------------------------------------------------------
# Wrapper
# ----------------------------------------------------------------------------

def _choose_spatial_tile(hw, batch, col_bytes, vmem_budget=10 << 20):
    """Pick a lane-dense (multiple-of-128) spatial tile under a VMEM budget."""
    if hw % 128 != 0:
        # The (8,128) rule then requires the full-extent block on the lane axis.
        return hw
    t = vmem_budget // (2 * max(col_bytes, 1))          # 2x for double buffering
    t = max(128, (t // 128) * 128)
    t = min(t, 16384)                                    # keeps v7x tiles moderate
    t = min(t, hw)
    # Keep the grid at >= 2 steps so dual-TC chips (v7x) both get work.
    if batch * pl.cdiv(hw, t) < 2 and t >= 256 and t % 256 == 0:
        t //= 2
    return t


def sft_layer(x_nchw, inter_nchw, params, *, compute_dtype=jnp.bfloat16):
    """SFT_layer forward.

    x_nchw:     (B, Cout, H, W)  -- any float dtype; output matches this dtype.
    inter_nchw: (B, Cin,  H, W)
    params:     PyTorch-style squeezed conv1x1 weights, each (Cout, Cin):
                wg1, wg2 (gamma branch), wb1, wb2 (beta branch).
    """
    B, Cout, H, W = x_nchw.shape
    Cin = inter_nchw.shape[1]
    HW = H * W

    # Free metadata reshapes: keep native NCHW layout, spatial dim on lanes.
    x3d = x_nchw.reshape(B, Cout, HW)
    inter3d = inter_nchw.reshape(B, Cin, HW)

    # Stack the two stage-1 weights along rows: one MXU dot feeds both branches.
    w1 = jnp.concatenate([params["wg1"], params["wb1"]], axis=0).astype(compute_dtype)
    wg2 = params["wg2"].astype(compute_dtype)
    wb2 = params["wb2"].astype(compute_dtype)

    col_bytes = (Cin * inter3d.dtype.itemsize
                 + Cout * x3d.dtype.itemsize
                 + Cout * x3d.dtype.itemsize)            # inter + x + out per column
    T = _choose_spatial_tile(HW, B, col_bytes)
    n_tiles = pl.cdiv(HW, T)

    out = pl.pallas_call(
        functools.partial(_sft_kernel, c_out=Cout, compute_dtype=compute_dtype),
        out_shape=jax.ShapeDtypeStruct((B, Cout, HW), x3d.dtype),
        grid=(B, n_tiles),
        in_specs=[
            pl.BlockSpec((None, Cout, T), lambda b, s: (b, 0, s)),      # x tile
            pl.BlockSpec((None, Cin, T), lambda b, s: (b, 0, s)),       # inter tile
            pl.BlockSpec((2 * Cout, Cin), lambda b, s: (0, 0)),         # [wg1 ; wb1]
            pl.BlockSpec((Cout, Cout), lambda b, s: (0, 0)),            # wg2
            pl.BlockSpec((Cout, Cout), lambda b, s: (0, 0)),            # wb2
        ],
        out_specs=pl.BlockSpec((None, Cout, T), lambda b, s: (b, 0, s)),
        compiler_params=pltpu.CompilerParams(
            dimension_semantics=("parallel", "parallel")),
    )(x3d, inter3d, w1, wg2, wb2)

    return out.reshape(B, Cout, H, W)                    # free metadata reshape


# ----------------------------------------------------------------------------
# Pure-JAX reference (f32) for a numerical sanity check
# ----------------------------------------------------------------------------

def sft_reference(x_nchw, inter_nchw, params):
    x = x_nchw.astype(jnp.float32)
    inter = inter_nchw.astype(jnp.float32)

    def conv1x1(w, t):  # w: (Cout, Cin), t: (B, Cin, H, W)
        return jnp.einsum("oi,bihw->bohw", w.astype(jnp.float32), t)

    gamma = conv1x1(params["wg2"], _leaky_relu(conv1x1(params["wg1"], inter)))
    beta = conv1x1(params["wb2"], _leaky_relu(conv1x1(params["wb1"], inter)))
    return x * gamma + beta


# ----------------------------------------------------------------------------
# Main
# ----------------------------------------------------------------------------

if __name__ == "__main__":
    # Module defaults: channels_in = channels_out = 64.
    B, C, H, W = 2, 64, 16, 16

    key = jax.random.PRNGKey(0)
    kx, ki, k1, k2, k3, k4 = jax.random.split(key, 6)
    # Activations in bf16 (halves HBM traffic for x/out in this HBM-bound op).
    x = jax.random.normal(kx, (B, C, H, W), jnp.float32).astype(jnp.bfloat16)
    inter = jax.random.normal(ki, (B, C, H, W), jnp.float32).astype(jnp.bfloat16)
    params = {
        "wg1": jax.random.normal(k1, (C, C), jnp.float32) * 0.05,
        "wg2": jax.random.normal(k2, (C, C), jnp.float32) * 0.05,
        "wb1": jax.random.normal(k3, (C, C), jnp.float32) * 0.05,
        "wb2": jax.random.normal(k4, (C, C), jnp.float32) * 0.05,
    }

    fwd = jax.jit(functools.partial(sft_layer, params=params))
    out = fwd(x, inter)
    jax.block_until_ready(out)

    ref = sft_reference(x, inter, params)
    out_f32 = out.astype(jnp.float32)
    rel_err = float(jnp.max(jnp.abs(out_f32 - ref)) / (jnp.max(jnp.abs(ref)) + 1e-6))

    assert out.shape == (B, C, H, W), out.shape
    assert out.dtype == x.dtype, out.dtype
    assert bool(jnp.all(jnp.isfinite(out_f32)))
    assert rel_err < 4e-2, rel_err   # bf16-MXU / bf16-storage / f32-accumulate tolerance
    print("KERNEL_OK")
</pallas_src>

<mosaic_0001>
module attributes {stable_mosaic.version = 11 : i64} {
  func.func @_sft_kernel(%arg0: i32, %arg1: i32, %arg2: memref<1x64x256xbf16, #tpu.memory_space<vmem>>, %arg3: memref<1x64x256xbf16, #tpu.memory_space<vmem>>, %arg4: memref<128x64xbf16, #tpu.memory_space<vmem>>, %arg5: memref<64x64xbf16, #tpu.memory_space<vmem>>, %arg6: memref<64x64xbf16, #tpu.memory_space<vmem>>, %arg7: memref<1x64x256xbf16, #tpu.memory_space<vmem>>) attributes {dimension_semantics = [#tpu.dimension_semantics<parallel>, #tpu.dimension_semantics<parallel>], iteration_bounds = array<i64: 2, 1>, scalar_prefetch = 0 : i64, scratch_operands = 0 : i64, tpu.core_type = #tpu.core_type<tc>, window_params = [{transform_indices = @transform_0, window_bounds = array<i64: 1, 64, 256>}, {transform_indices = @transform_1, window_bounds = array<i64: 1, 64, 256>}, {pipeline_mode = #tpu.pipeline_mode<synchronous>, transform_indices = @transform_2, window_bounds = array<i64: 128, 64>}, {pipeline_mode = #tpu.pipeline_mode<synchronous>, transform_indices = @transform_3, window_bounds = array<i64: 64, 64>}, {pipeline_mode = #tpu.pipeline_mode<synchronous>, transform_indices = @transform_4, window_bounds = array<i64: 64, 64>}, {transform_indices = @transform_5, window_bounds = array<i64: 1, 64, 256>}]} {
    %c0 = arith.constant 0 : index
    %c0_0 = arith.constant 0 : index
    %c0_1 = arith.constant 0 : index
    %0 = vector.load %arg3[%c0, %c0_0, %c0_1] : memref<1x64x256xbf16, #tpu.memory_space<vmem>>, vector<1x64x256xbf16>
    %1 = vector.shape_cast %0 : vector<1x64x256xbf16> to vector<64x256xbf16>
    %c0_2 = arith.constant 0 : index
    %c0_3 = arith.constant 0 : index
    %2 = vector.load %arg4[%c0_2, %c0_3] : memref<128x64xbf16, #tpu.memory_space<vmem>>, vector<128x64xbf16>
    %cst = arith.constant dense<0.000000e+00> : vector<128x256xf32>
    %3 = tpu.matmul %2, %1, %cst {dimension_numbers = #tpu.dot_dimension_numbers<[1], [0], [0], [1], [0, 0, 1, 1], [], []>} : vector<128x64xbf16>, vector<64x256xbf16>, vector<128x256xf32> -> vector<128x256xf32>
    %cst_4 = arith.constant 0.000000e+00 : f32
    %4 = vector.broadcast %cst_4 : f32 to vector<128x256xf32>
    %5 = arith.cmpf oge, %3, %4 : vector<128x256xf32>
    %cst_5 = arith.constant 1.000000e-01 : f32
    %6 = vector.broadcast %cst_5 : f32 to vector<128x256xf32>
    %7 = arith.mulf %6, %3 : vector<128x256xf32>
    %8 = arith.select %5, %3, %7 : vector<128x256xi1>, vector<128x256xf32>
    %9 = arith.truncf %8 : vector<128x256xf32> to vector<128x256xbf16>
    %c0_6 = arith.constant 0 : index
    %c0_7 = arith.constant 0 : index
    %10 = vector.load %arg5[%c0_6, %c0_7] : memref<64x64xbf16, #tpu.memory_space<vmem>>, vector<64x64xbf16>
    %11 = vector.extract_strided_slice %9 {offsets = [0, 0], sizes = [64, 256], strides = [1, 1]} : vector<128x256xbf16> to vector<64x256xbf16>
    %cst_8 = arith.constant dense<0.000000e+00> : vector<64x256xf32>
    %12 = tpu.matmul %10, %11, %cst_8 {dimension_numbers = #tpu.dot_dimension_numbers<[1], [0], [0], [1], [0, 0, 1, 1], [], []>} : vector<64x64xbf16>, vector<64x256xbf16>, vector<64x256xf32> -> vector<64x256xf32>
    %c0_9 = arith.constant 0 : index
    %c0_10 = arith.constant 0 : index
    %13 = vector.load %arg6[%c0_9, %c0_10] : memref<64x64xbf16, #tpu.memory_space<vmem>>, vector<64x64xbf16>
    %14 = vector.extract_strided_slice %9 {offsets = [64, 0], sizes = [64, 256], strides = [1, 1]} : vector<128x256xbf16> to vector<64x256xbf16>
    %cst_11 = arith.constant dense<0.000000e+00> : vector<64x256xf32>
    %15 = tpu.matmul %13, %14, %cst_11 {dimension_numbers = #tpu.dot_dimension_numbers<[1], [0], [0], [1], [0, 0, 1, 1], [], []>} : vector<64x64xbf16>, vector<64x256xbf16>, vector<64x256xf32> -> vector<64x256xf32>
    %c0_12 = arith.constant 0 : index
    %c0_13 = arith.constant 0 : index
    %c0_14 = arith.constant 0 : index
    %16 = vector.load %arg2[%c0_12, %c0_13, %c0_14] : memref<1x64x256xbf16, #tpu.memory_space<vmem>>, vector<1x64x256xbf16>
    %17 = vector.shape_cast %16 : vector<1x64x256xbf16> to vector<64x256xbf16>
    %18 = arith.extf %17 : vector<64x256xbf16> to vector<64x256xf32>
    %19 = arith.mulf %18, %12 : vector<64x256xf32>
    %20 = arith.addf %19, %15 : vector<64x256xf32>
    %21 = arith.truncf %20 : vector<64x256xf32> to vector<64x256xbf16>
    %c0_15 = arith.constant 0 : index
    %c0_16 = arith.constant 0 : index
    %c0_17 = arith.constant 0 : index
    %22 = vector.load %arg7[%c0_15, %c0_16, %c0_17] : memref<1x64x256xbf16, #tpu.memory_space<vmem>>, vector<1x64x256xbf16>
    %23 = vector.shape_cast %22 : vector<1x64x256xbf16> to vector<64x256xbf16>
    %24 = vector.shape_cast %21 : vector<64x256xbf16> to vector<1x64x256xbf16>
    tpu.vector_store %arg7[%c0_15, %c0_16, %c0_17], %24 {strides = array<i32>} : memref<1x64x256xbf16, #tpu.memory_space<vmem>>, vector<1x64x256xbf16>,
    return
  }
  func.func @transform_0(%arg0: i32, %arg1: i32) -> (i32, i32, i32) {
    %c0_i32 = arith.constant 0 : i32
    %c0_i32_0 = arith.constant 0 : i32
    return %arg0, %c0_i32, %arg1 : i32, i32, i32
  }
  func.func @transform_1(%arg0: i32, %arg1: i32) -> (i32, i32, i32) {
    %c0_i32 = arith.constant 0 : i32
    %c0_i32_0 = arith.constant 0 : i32
    return %arg0, %c0_i32, %arg1 : i32, i32, i32
  }
  func.func @transform_2(%arg0: i32, %arg1: i32) -> (i32, i32) {
    %c0_i32 = arith.constant 0 : i32
    %c0_i32_0 = arith.constant 0 : i32
    %c0_i32_1 = arith.constant 0 : i32
    return %c0_i32, %c0_i32_0 : i32, i32
  }
  func.func @transform_3(%arg0: i32, %arg1: i32) -> (i32, i32) {
    %c0_i32 = arith.constant 0 : i32
    %c0_i32_0 = arith.constant 0 : i32
    %c0_i32_1 = arith.constant 0 : i32
    return %c0_i32, %c0_i32_0 : i32, i32
  }
  func.func @transform_4(%arg0: i32, %arg1: i32) -> (i32, i32) {
    %c0_i32 = arith.constant 0 : i32
    %c0_i32_0 = arith.constant 0 : i32
    %c0_i32_1 = arith.constant 0 : i32
    return %c0_i32, %c0_i32_0 : i32, i32
  }
  func.func @transform_5(%arg0: i32, %arg1: i32) -> (i32, i32, i32) {
    %c0_i32 = arith.constant 0 : i32
    %c0_i32_0 = arith.constant 0 : i32
    return %arg0, %c0_i32, %arg1 : i32, i32, i32
  }
}

</mosaic_0001>

<bundles_post_ra>
// kernel: sft_layer.1
= control target key start
LH: loop header
LB: loop body
LE: loop exit
PB: predicated region body
PF: predicated region fallthrough
CT: control target
= control target key end

     0   :  { %s1278_s18 = smov 0   ;;  %s1280_s19 = smov 0   ;;  %s1434_s0 = inlined_call_operand.vmem [shape: bf16[2,64,256], index: 0, kind: input, shape index: {}]   ;;  %s1435_s1 = inlined_call_operand.vmem [shape: bf16[2,64,256], index: 1, kind: input, shape index: {}]   ;;  %s1436_s2 = inlined_call_operand.vmem [shape: bf16[128,64], index: 2, kind: input, shape index: {}]   ;;  %s1437_s3 = inlined_call_operand.vmem [shape: bf16[64,64], index: 3, kind: input, shape index: {}]   ;;  %s1438_s4 = inlined_call_operand.vmem [shape: bf16[64,64], index: 4, kind: input, shape index: {}]   ;;  %s1439_s5 = inlined_call_operand.vmem [shape: bf16[2,64,256], index: 5, kind: output, shape index: {}]  }
   0x1   :  { %s1282_s20 = smov 0  }
   0x2 LB: > { %s27_s21 = sadd.s32 1, %s1241_s19  ;;  %p1102_p0 = scmp.ge.s32.totalorder %s1245_s20, 1  ;;  %s1245_s20 = sphi %s1282_s20, %s15_s20   ;;  %s1241_s19 = sphi %s1280_s19, %s1441_s19   ;;  %s1237_s18 = sphi %s1278_s18, %s1440_s18  }
   0x3   : > { %p29_p1 = scmp.ge.s32.totalorder %s27_s21, 2  ;;  %p225_p2 = scmp.lt.s32.totalorder %s1245_s20, 3 }
   0x5   : > { %s1443_s21 = smov (%p29_p1, %s27_s21), 0  ;;  %p226_p3 = pnand %p1102_p0, %p225_p2 }
   0x6   : > { %p271_p4 = scmp.lt.s32.totalorder (!%p226_p3), %s1237_s18, 1  ;;  %v1247_v0 = vmov (!%p226_p3), 0   ;;  %v1207_v9 = vld [vmem:[%s1436_s2] sm:$0xff] (!%p226_p3)   ;;  %vm405_vm0 = vcmask (!%p226_p3), 523264   ;;  %v1208_v10 = vld [vmem:[%s1436_s2 + $0x8] sm:$0xff] (!%p226_p3)   ;;  %v1209_v11 = vld [vmem:[%s1436_s2 + $0x10] sm:$0xff] (!%p226_p3)  }
   0x7   : > { %229 = sbr.rel (%p226_p3) target bundleno = 558 (0x22e), region = 40  ;;  %462 = vmatprep.mubr.bf16.mxu0 (!%p226_p3), %v1247_v0  ;;  %727 = vmatprep.mubr.bf16.mxu1 (!%p226_p3), %v1247_v0  ;;  %v1210_v12 = vld [vmem:[%s1436_s2 + $0x18] sm:$0xff] (!%p226_p3)   ;;  %v1211_v13 = vld [vmem:[%s1436_s2 + $0x20] sm:$0xff] (!%p226_p3)   ;;  %v1212_v14 = vld [vmem:[%s1436_s2 + $0x28] sm:$0xff] (!%p226_p3)  }
   0x8   : > { %v1213_v15 = vld [vmem:[%s1436_s2 + $0x30] sm:$0xff] (!%p226_p3)   ;;  %v1214_v16 = vld [vmem:[%s1436_s2 + $0x38] sm:$0xff] (!%p226_p3)  }
   0xe   : > { %s1445_s18 = smov (!%p271_p4, %s1237_s18), 1 }
   0xf   : > { %s1298_s22 = sshll.u32 %s1445_s18, 6 }
  0x10   : > { %s288_s25 = scalar_lea.vmem %s1435_s1, %s1298_s22  ;;  %s1388_s14 = scalar_lea.vmem %s1434_s0, %s1298_s22 }
  0x11   : > { %v1195_v1 = vld [vmem:[%s288_s25 + $0x4] ss:$8 sps:$4 sm:$0xff]   ;;  %v1197_v2 = vld [vmem:[%s288_s25] ss:$8 sps:$4 sm:$0xff]   ;;  %v1198_v3 = vld [vmem:[%s288_s25 + $0x14] ss:$8 sps:$4 sm:$0xff]   ;;  %s1406_s17 = scalar_lea.vmem %s1439_s5, %s1298_s22 }
  0x12   : > { %430 = vmatprep.subr.bf16.mxu0 %v1195_v1  ;;  %v1200_v4 = vld [vmem:[%s288_s25 + $0x10] ss:$8 sps:$4 sm:$0xff]   ;;  %v1201_v5 = vld [vmem:[%s288_s25 + $0x24] ss:$8 sps:$4 sm:$0xff]   ;;  %v1203_v6 = vld [vmem:[%s288_s25 + $0x20] ss:$8 sps:$4 sm:$0xff]  }
  0x13   : > { %431 = vmatpush1.bf16.msra.mxu0 %v1197_v2  ;;  %v1204_v7 = vld [vmem:[%s288_s25 + $0x34] ss:$8 sps:$4 sm:$0xff]   ;;  %v1206_v8 = vld [vmem:[%s288_s25 + $0x30] ss:$8 sps:$4 sm:$0xff]  }
  0x14   : > { %432 = vmatprep.subr.bf16.mxu0 %v1198_v3 }
  0x17   : > { %433 = vmatpush1.bf16.msra.mxu0 %v1200_v4 }
  0x18   : > { %434 = vmatprep.subr.bf16.mxu0 %v1201_v5 }
  0x1b   : > { %435 = vmatpush1.bf16.msra.mxu0 %v1203_v6 }
  0x1c   : > { %436 = vmatprep.subr.bf16.mxu0 %v1204_v7 }
  0x1f   : > { %437 = vmatpush1.bf16.msra.mxu0 %v1206_v8 }
  0x22   : > { %1125 = vmatmul.mubr.msk.bf16.vlgmr.msra.gmra.mrb[0].mxu0 %vm405_vm0, %v1207_v9 }
  0x23   : > { %472 = vmatprep.mubr.bf16.mxu0 %v1247_v0 }
  0x2a   : > { %1126 = vmatmul.mubr.msk.bf16.gmra.mrb[4].mxu0 %vm405_vm0, %v1208_v10 }
  0x2b   : > { %482 = vmatprep.mubr.bf16.mxu0 %v1247_v0 }
  0x32   : > { %1127 = vmatmul.mubr.msk.bf16.gmra.mrb[8].mxu0 %vm405_vm0, %v1209_v11 }
  0x33   : > { %492 = vmatprep.mubr.bf16.mxu0 %v1247_v0 }
  0x3a   : > { %1128 = vmatmul.mubr.msk.bf16.gmra.mrb[12].mxu0 %vm405_vm0, %v1210_v12 }
  0x3b   : > { %502 = vmatprep.mubr.bf16.mxu0 %v1247_v0 }
  0x42   : > { %1129 = vmatmul.mubr.msk.bf16.gmra.mrb[16].mxu0 %vm405_vm0, %v1211_v13  ;;  %v1215_v13 = vld [vmem:[%s1437_s3] sm:$0xff]  }
  0x43   : > { %512 = vmatprep.mubr.bf16.mxu0 %v1247_v0 }
  0x4a   : > { %1130 = vmatmul.mubr.msk.bf16.gmra.mrb[20].mxu0 %vm405_vm0, %v1212_v14 }
  0x4b   : > { %522 = vmatprep.mubr.bf16.mxu0 %v1247_v0 }
  0x52   : > { %1131 = vmatmul.mubr.msk.bf16.gmra.mrb[24].mxu0 %vm405_vm0, %v1213_v15 }
  0x53   : > { %532 = vmatprep.mubr.bf16.mxu0 %v1247_v0 }
  0x5a   : > { %1132 = vmatmul.mubr.msk.bf16.gmra.mrb[28].mxu0 %vm405_vm0, %v1214_v16 }
  0xf5   : > { %v464_v17 = vpop.f32.mrb[0].mxu0 }
  0xf6   : > { %v575_v18 = vmul.f32 0.1, %v464_v17  ;;  %v466_v19 = vpop.f32.mrb[1].mxu0  ;;  %vm543_vm1 = vcmp.ge.f32.partialorder %v464_v17, 0.0 }
  0xf7   : > { %v576_v20 = vmul.f32 0.1, %v466_v19  ;;  %v468_v21 = vpop.f32.mrb[2].mxu0  ;;  %vm544_vm3 = vcmp.ge.f32.partialorder %v466_v19, 0.0 }
  0xf8   : > { %vm545_vm2 = vcmp.ge.f32.partialorder %v468_v21, 0.0  ;;  %v577_v22 = vmul.f32 0.1, %v468_v21  ;;  %v470_v23 = vpop.f32.mrb[3].mxu0  ;;  %v607_v25 = vsel %vm543_vm1, %v464_v17, %v575_v18 }
  0xf9   : > { %v578_v24 = vmul.f32 0.1, %v470_v23  ;;  %vm546_vm4 = vcmp.ge.f32.partialorder %v470_v23, 0.0  ;;  %v608_v27 = vsel %vm544_vm3, %v466_v19, %v576_v20 }
  0xfa   : > { %v609_v26 = vsel %vm545_vm2, %v468_v21, %v577_v22 }
  0xfb   : > { %v610_v28 = vsel %vm546_vm4, %v470_v23, %v578_v24  ;;  %v639_v29 = vpack.c.bf16 %v609_v26, %v607_v25 }
  0xfc   : > { %v640_v30 = vpack.c.bf16 %v610_v28, %v608_v27  ;;  %v1216_v28 = vld [vmem:[%s1437_s3 + $0x8] sm:$0xff]  }
  0xfd   : > { %v474_v31 = vpop.f32.mrb[4].mxu0 }
  0xfe   : > { %v579_v32 = vmul.f32 0.1, %v474_v31  ;;  %v476_v33 = vpop.f32.mrb[5].mxu0  ;;  %695 = vmatprep.subr.bf16.mxu1 %v640_v30  ;;  %vm547_vm5 = vcmp.ge.f32.partialorder %v474_v31, 0.0 }
  0xff   : > { %v580_v34 = vmul.f32 0.1, %v476_v33  ;;  %v478_v35 = vpop.f32.mrb[6].mxu0  ;;  %696 = vmatpush1.bf16.msra.mxu1 %v639_v29  ;;  %vm548_vm6 = vcmp.ge.f32.partialorder %v476_v33, 0.0 }
 0x100   : > { %vm549_vm7 = vcmp.ge.f32.partialorder %v478_v35, 0.0  ;;  %v581_v36 = vmul.f32 0.1, %v478_v35  ;;  %v480_v37 = vpop.f32.mrb[7].mxu0  ;;  %v611_v39 = vsel %vm547_vm5, %v474_v31, %v579_v32 }
 0x101   : > { %vm550_vm8 = vcmp.ge.f32.partialorder %v480_v37, 0.0  ;;  %v582_v38 = vmul.f32 0.1, %v480_v37  ;;  %v612_v41 = vsel %vm548_vm6, %v476_v33, %v580_v34 }
 0x102   : > { %v613_v40 = vsel %vm549_vm7, %v478_v35, %v581_v36 }
 0x103   : > { %v614_v42 = vsel %vm550_vm8, %v480_v37, %v582_v38  ;;  %v641_v43 = vpack.c.bf16 %v613_v40, %v611_v39 }
 0x104   : > { %v642_v44 = vpack.c.bf16 %v614_v42, %v612_v41 }
 0x105   : > { %v484_v45 = vpop.f32.mrb[8].mxu0 }
 0x106   : > { %v583_v46 = vmul.f32 0.1, %v484_v45  ;;  %v486_v47 = vpop.f32.mrb[9].mxu0  ;;  %697 = vmatprep.subr.bf16.mxu1 %v642_v44  ;;  %vm551_vm9 = vcmp.ge.f32.partialorder %v484_v45, 0.0 }
 0x107   : > { %v584_v48 = vmul.f32 0.1, %v486_v47  ;;  %v488_v49 = vpop.f32.mrb[10].mxu0  ;;  %698 = vmatpush1.bf16.msra.mxu1 %v641_v43  ;;  %vm552_vm10 = vcmp.ge.f32.partialorder %v486_v47, 0.0  ;;  %v1217_v43 = vld [vmem:[%s1437_s3 + $0x10] sm:$0xff]  }
 0x108   : > { %vm553_vm11 = vcmp.ge.f32.partialorder %v488_v49, 0.0  ;;  %v585_v50 = vmul.f32 0.1, %v488_v49  ;;  %v490_v51 = vpop.f32.mrb[11].mxu0  ;;  %v615_v53 = vsel %vm551_vm9, %v484_v45, %v583_v46 }
 0x109   : > { %vm554_vm12 = vcmp.ge.f32.partialorder %v490_v51, 0.0  ;;  %v586_v52 = vmul.f32 0.1, %v490_v51  ;;  %v616_v55 = vsel %vm552_vm10, %v486_v47, %v584_v48 }
 0x10a   : > { %v617_v54 = vsel %vm553_vm11, %v488_v49, %v585_v50 }
 0x10b   : > { %v618_v56 = vsel %vm554_vm12, %v490_v51, %v586_v52  ;;  %v643_v57 = vpack.c.bf16 %v617_v54, %v615_v53 }
 0x10c   : > { %v644_v58 = vpack.c.bf16 %v618_v56, %v616_v55 }
 0x10d   : > { %v494_v59 = vpop.f32.mrb[12].mxu0 }
 0x10e   : > { %v587_v60 = vmul.f32 0.1, %v494_v59  ;;  %v496_v61 = vpop.f32.mrb[13].mxu0  ;;  %699 = vmatprep.subr.bf16.mxu1 %v644_v58  ;;  %vm555_vm13 = vcmp.ge.f32.partialorder %v494_v59, 0.0  ;;  %v1218_v58 = vld [vmem:[%s1437_s3 + $0x18] sm:$0xff]  }
 0x10f   : > { %v588_v62 = vmul.f32 0.1, %v496_v61  ;;  %v498_v63 = vpop.f32.mrb[14].mxu0  ;;  %700 = vmatpush1.bf16.msra.mxu1 %v643_v57  ;;  %vm556_vm14 = vcmp.ge.f32.partialorder %v496_v61, 0.0 }
 0x110   : > { %vm557_vm15 = vcmp.ge.f32.partialorder %v498_v63, 0.0  ;;  %v589_v1 = vmul.f32 0.1, %v498_v63  ;;  %v500_v2 = vpop.f32.mrb[15].mxu0  ;;  %v619_v4 = vsel %vm555_vm13, %v494_v59, %v587_v60 }
 0x111   : > { %vm558_vm1 = vcmp.ge.f32.partialorder %v500_v2, 0.0  ;;  %v590_v3 = vmul.f32 0.1, %v500_v2  ;;  %v620_v6 = vsel %vm556_vm14, %v496_v61, %v588_v62 }
 0x112   : > { %v621_v5 = vsel %vm557_vm15, %v498_v63, %v589_v1 }
 0x113   : > { %v622_v7 = vsel %vm558_vm1, %v500_v2, %v590_v3  ;;  %v645_v8 = vpack.c.bf16 %v621_v5, %v619_v4 }
 0x114   : > { %v646_v9 = vpack.c.bf16 %v622_v7, %v620_v6  ;;  %v1219_v7 = vld [vmem:[%s1438_s4] sm:$0xff]  }
 0x115   : > { %v504_v10 = vpop.f32.mrb[16].mxu0 }
 0x116   : > { %v591_v11 = vmul.f32 0.1, %v504_v10  ;;  %v506_v12 = vpop.f32.mrb[17].mxu0  ;;  %701 = vmatprep.subr.bf16.mxu1 %v646_v9  ;;  %vm559_vm2 = vcmp.ge.f32.partialorder %v504_v10, 0.0  ;;  %v1221_v9 = vld [vmem:[%s1438_s4 + $0x10] sm:$0xff]  }
 0x117   : > { %v592_v14 = vmul.f32 0.1, %v506_v12  ;;  %v508_v15 = vpop.f32.mrb[18].mxu0  ;;  %702 = vmatpush1.bf16.msra.mxu1 %v645_v8  ;;  %vm560_vm3 = vcmp.ge.f32.partialorder %v506_v12, 0.0  ;;  %v1220_v8 = vld [vmem:[%s1438_s4 + $0x8] sm:$0xff]  }
 0x118   : > { %vm561_vm4 = vcmp.ge.f32.partialorder %v508_v15, 0.0  ;;  %v593_v16 = vmul.f32 0.1, %v508_v15  ;;  %v510_v17 = vpop.f32.mrb[19].mxu0  ;;  %v623_v19 = vsel %vm559_vm2, %v504_v10, %v591_v11  ;;  %v1222_v10 = vld [vmem:[%s1438_s4 + $0x18] sm:$0xff]  }
 0x119   : > { %vm562_vm5 = vcmp.ge.f32.partialorder %v510_v17, 0.0  ;;  %v594_v18 = vmul.f32 0.1, %v510_v17  ;;  %v624_v21 = vsel %vm560_vm3, %v506_v12, %v592_v14 }
 0x11a   : > { %v625_v20 = vsel %vm561_vm4, %v508_v15, %v593_v16  ;;  %1137 = vmatmul.mubr.msk.bf16.vlgmr.msra.gmra.mrb[0].mxu1 %vm405_vm0, %v1215_v13 }
 0x11b   : > { %v647_v22 = vpack.c.bf16 %v625_v20, %v623_v19  ;;  %v626_v23 = vsel %vm562_vm5, %v510_v17, %v594_v18  ;;  %737 = vmatprep.mubr.bf16.mxu1 %v1247_v0 }
 0x11c   : > { %v648_v24 = vpack.c.bf16 %v626_v23, %v624_v21 }
 0x11d   : > { %v514_v25 = vpop.f32.mrb[20].mxu0 }
 0x11e   : > { %v595_v26 = vmul.f32 0.1, %v514_v25  ;;  %v516_v27 = vpop.f32.mrb[21].mxu0  ;;  %808 = vmatprep.subr.bf16.mxu1 %v648_v24  ;;  %vm563_vm6 = vcmp.ge.f32.partialorder %v514_v25, 0.0 }
 0x11f   : > { %v596_v29 = vmul.f32 0.1, %v516_v27  ;;  %v518_v30 = vpop.f32.mrb[22].mxu0  ;;  %809 = vmatpush1.bf16.msra.mxu1 %v647_v22  ;;  %vm564_vm7 = vcmp.ge.f32.partialorder %v516_v27, 0.0 }
 0x120   : > { %vm565_vm8 = vcmp.ge.f32.partialorder %v518_v30, 0.0  ;;  %v597_v31 = vmul.f32 0.1, %v518_v30  ;;  %v520_v32 = vpop.f32.mrb[23].mxu0  ;;  %v627_v34 = vsel %vm563_vm6, %v514_v25, %v595_v26  ;;  %v882_v25 = vld [vmem:[%s1388_s14 + $0x8] sm:$0xff] }
 0x121   : > { %vm566_vm9 = vcmp.ge.f32.partialorder %v520_v32, 0.0  ;;  %v598_v33 = vmul.f32 0.1, %v520_v32  ;;  %v628_v36 = vsel %vm564_vm7, %v516_v27, %v596_v29 }
 0x122   : > { %v629_v35 = vsel %vm565_vm8, %v518_v30, %v597_v31  ;;  %1138 = vmatmul.mubr.msk.bf16.gmra.mrb[4].mxu1 %vm405_vm0, %v1216_v28  ;;  %v891_v30 = vunpack.c.l.bf16 %v882_v25  ;;  %v892_v31 = vunpack.c.h.bf16 %v882_v25 }
 0x123   : > { %v649_v37 = vpack.c.bf16 %v629_v35, %v627_v34  ;;  %v630_v38 = vsel %vm566_vm9, %v520_v32, %v598_v33  ;;  %747 = vmatprep.mubr.bf16.mxu1 %v1247_v0  ;;  %v883_v34 = vld [vmem:[%s1388_s14 + $0x10] sm:$0xff] }
 0x124   : > { %v650_v39 = vpack.c.bf16 %v630_v38, %v628_v36 }
 0x125   : > { %v524_v40 = vpop.f32.mrb[24].mxu0 }
 0x126   : > { %v599_v41 = vmul.f32 0.1, %v524_v40  ;;  %v526_v42 = vpop.f32.mrb[25].mxu0  ;;  %810 = vmatprep.subr.bf16.mxu1 %v650_v39  ;;  %vm567_vm10 = vcmp.ge.f32.partialorder %v524_v40, 0.0 }
 0x127   : > { %v600_v44 = vmul.f32 0.1, %v526_v42  ;;  %v528_v45 = vpop.f32.mrb[26].mxu0  ;;  %811 = vmatpush1.bf16.msra.mxu1 %v649_v37  ;;  %vm568_vm11 = vcmp.ge.f32.partialorder %v526_v42, 0.0 }
 0x128   : > { %vm569_vm12 = vcmp.ge.f32.partialorder %v528_v45, 0.0  ;;  %v601_v46 = vmul.f32 0.1, %v528_v45  ;;  %v530_v47 = vpop.f32.mrb[27].mxu0  ;;  %v631_v49 = vsel %vm567_vm10, %v524_v40, %v599_v41  ;;  %v884_v40 = vld [vmem:[%s1388_s14 + $0x18] sm:$0xff] }
 0x129   : > { %vm570_vm13 = vcmp.ge.f32.partialorder %v530_v47, 0.0  ;;  %v602_v48 = vmul.f32 0.1, %v530_v47  ;;  %v632_v51 = vsel %vm568_vm11, %v526_v42, %v600_v44 }
 0x12a   : > { %v633_v50 = vsel %vm569_vm12, %v528_v45, %v601_v46  ;;  %1139 = vmatmul.mubr.msk.bf16.gmra.mrb[8].mxu1 %vm405_vm0, %v1217_v43  ;;  %v893_v43 = vunpack.c.l.bf16 %v883_v34  ;;  %v894_v46 = vunpack.c.h.bf16 %v883_v34 }
 0x12b   : > { %v651_v52 = vpack.c.bf16 %v633_v50, %v631_v49  ;;  %v634_v53 = vsel %vm570_vm13, %v530_v47, %v602_v48  ;;  %757 = vmatprep.mubr.bf16.mxu1 %v1247_v0  ;;  %v895_v49 = vunpack.c.l.bf16 %v884_v40  ;;  %v896_v50 = vunpack.c.h.bf16 %v884_v40 }
 0x12c   : > { %v652_v54 = vpack.c.bf16 %v634_v53, %v632_v51 }
 0x12d   : > { %v534_v55 = vpop.f32.mrb[28].mxu0 }
 0x12e   : > { %v603_v56 = vmul.f32 0.1, %v534_v55  ;;  %v536_v57 = vpop.f32.mrb[29].mxu0  ;;  %812 = vmatprep.subr.bf16.mxu1 %v652_v54  ;;  %vm571_vm14 = vcmp.ge.f32.partialorder %v534_v55, 0.0  ;;  %v885_v54 = vld [vmem:[%s1388_s14 + $0x20] sm:$0xff] }
 0x12f   : > { %v604_v59 = vmul.f32 0.1, %v536_v57  ;;  %v538_v60 = vpop.f32.mrb[30].mxu0  ;;  %813 = vmatpush1.bf16.msra.mxu1 %v651_v52  ;;  %vm572_vm15 = vcmp.ge.f32.partialorder %v536_v57, 0.0 }
 0x130   : > { %vm573_vm1 = vcmp.ge.f32.partialorder %v538_v60, 0.0  ;;  %v605_v61 = vmul.f32 0.1, %v538_v60  ;;  %v540_v62 = vpop.f32.mrb[31].mxu0  ;;  %v635_v1 = vsel %vm571_vm14, %v534_v55, %v603_v56 }
 0x131   : > { %vm574_vm2 = vcmp.ge.f32.partialorder %v540_v62, 0.0  ;;  %v606_v63 = vmul.f32 0.1, %v540_v62  ;;  %v636_v3 = vsel %vm572_vm15, %v536_v57, %v604_v59 }
 0x132   : > { %v637_v2 = vsel %vm573_vm1, %v538_v60, %v605_v61  ;;  %1140 = vmatmul.mubr.msk.bf16.gmra.mrb[12].mxu1 %vm405_vm0, %v1218_v58  ;;  %v886_v60 = vld [vmem:[%s1388_s14 + $0x28] sm:$0xff] }
 0x133   : > { %v653_v4 = vpack.c.bf16 %v637_v2, %v635_v1  ;;  %v638_v5 = vsel %vm574_vm2, %v540_v62, %v606_v63  ;;  %840 = vmatprep.mubr.bf16.mxu1 %v1247_v0  ;;  %v897_v63 = vunpack.c.l.bf16 %v885_v54 }
 0x134   : > { %v654_v6 = vpack.c.bf16 %v638_v5, %v636_v3  ;;  %v898_v3 = vunpack.c.h.bf16 %v885_v54 }
 0x136   : > { %814 = vmatprep.subr.bf16.mxu1 %v654_v6  ;;  %v899_v6 = vunpack.c.l.bf16 %v886_v60 }
 0x137   : > { %815 = vmatpush1.bf16.msra.mxu1 %v653_v4 }
 0x13a   : > { %1145 = vmatmul.mubr.msk.bf16.vlgmr.msra.gmra.mrb[16].mxu1 %vm405_vm0, %v1219_v7  ;;  %v900_v7 = vunpack.c.h.bf16 %v886_v60 }
 0x13b   : > { %850 = vmatprep.mubr.bf16.mxu1 %v1247_v0 }
 0x142   : > { %1146 = vmatmul.mubr.msk.bf16.gmra.mrb[20].mxu1 %vm405_vm0, %v1220_v8 }
 0x143   : > { %860 = vmatprep.mubr.bf16.mxu1 %v1247_v0 }
 0x14a   : > { %1147 = vmatmul.mubr.msk.bf16.gmra.mrb[24].mxu1 %vm405_vm0, %v1221_v9 }
 0x14b   : > { %870 = vmatprep.mubr.bf16.mxu1 %v1247_v0  ;;  %v881_v0 = vld [vmem:[%s1388_s14] sm:$0xff] }
 0x14c   : > { %v889_v27 = vunpack.c.l.bf16 %v881_v0  ;;  %v890_v29 = vunpack.c.h.bf16 %v881_v0 }
 0x152   : > { %1148 = vmatmul.mubr.msk.bf16.gmra.mrb[28].mxu1 %vm405_vm0, %v1222_v10 }
 0x1ed   : > { %v729_v11 = vpop.f32.mrb[0].mxu1 }
 0x1ee   : > { %v731_v12 = vpop.f32.mrb[1].mxu1  ;;  %v905_v32 = vmul.f32 %v889_v27, %v729_v11  ;;  %v887_v11 = vld [vmem:[%s1388_s14 + $0x30] sm:$0xff] }
 0x1ef   : > { %v733_v13 = vpop.f32.mrb[2].mxu1  ;;  %v906_v33 = vmul.f32 %v890_v29, %v731_v12  ;;  %v901_v25 = vunpack.c.l.bf16 %v887_v11 }
 0x1f0   : > { %v735_v14 = vpop.f32.mrb[3].mxu1  ;;  %v907_v36 = vmul.f32 %v891_v30, %v733_v13  ;;  %v902_v30 = vunpack.c.h.bf16 %v887_v11 }
 0x1f1   : > { %v908_v39 = vmul.f32 %v892_v31, %v735_v14 }
 0x1f5   : > { %v739_v15 = vpop.f32.mrb[4].mxu1 }
 0x1f6   : > { %v741_v16 = vpop.f32.mrb[5].mxu1  ;;  %v909_v52 = vmul.f32 %v893_v43, %v739_v15 }
 0x1f7   : > { %v743_v17 = vpop.f32.mrb[6].mxu1  ;;  %v910_v53 = vmul.f32 %v894_v46, %v741_v16 }
 0x1f8   : > { %v745_v18 = vpop.f32.mrb[7].mxu1  ;;  %v911_v56 = vmul.f32 %v895_v49, %v743_v17  ;;  %v888_v17 = vld [vmem:[%s1388_s14 + $0x38] sm:$0xff] }
 0x1f9   : > { %v912_v59 = vmul.f32 %v896_v50, %v745_v18 }
 0x1fd   : > { %v749_v19 = vpop.f32.mrb[8].mxu1 }
 0x1fe   : > { %v751_v20 = vpop.f32.mrb[9].mxu1  ;;  %v913_v9 = vmul.f32 %v897_v63, %v749_v19 }
 0x1ff   : > { %v753_v21 = vpop.f32.mrb[10].mxu1  ;;  %v914_v10 = vmul.f32 %v898_v3, %v751_v20  ;;  %v903_v20 = vunpack.c.l.bf16 %v888_v17 }
 0x200   : > { %v1382_v22 = vpop.f32.mrb[11].mxu1  ;;  %v915_v13 = vmul.f32 %v899_v6, %v753_v21 }
 0x201   : > { %v916_v16 = vmul.f32 %v900_v7, %v1382_v22 }
 0x205   : > { %v1391_v23 = vpop.f32.mrb[12].mxu1 }
 0x206   : > { %v1393_v24 = vpop.f32.mrb[13].mxu1  ;;  %v917_v21 = vmul.f32 %v901_v25, %v1391_v23 }
 0x207   : > { %v1396_v26 = vpop.f32.mrb[14].mxu1  ;;  %v918_v22 = vmul.f32 %v902_v30, %v1393_v24 }
 0x208   : > { %v1398_v28 = vpop.f32.mrb[15].mxu1 }
 0x20d   : > { %v842_v35 = vpop.f32.mrb[16].mxu1 }
 0x20e   : > { %v921_v37 = vadd.f32 %v905_v32, %v842_v35  ;;  %v844_v38 = vpop.f32.mrb[17].mxu1  ;;  %v904_v32 = vunpack.c.h.bf16 %v888_v17  ;;  %v919_v35 = vmul.f32 %v903_v20, %v1396_v26 }
 0x20f   : > { %v922_v41 = vadd.f32 %v906_v33, %v844_v38  ;;  %v846_v42 = vpop.f32.mrb[18].mxu1 }
 0x210   : > { %v923_v44 = vadd.f32 %v907_v36, %v846_v42  ;;  %v848_v45 = vpop.f32.mrb[19].mxu1  ;;  %v920_v38 = vmul.f32 %v904_v32, %v1398_v28 }
 0x211   : > { %v1162_v47 = vpack.c.bf16 %v922_v41, %v921_v37  ;;  %v924_v48 = vadd.f32 %v908_v39, %v848_v45 }
 0x213   : > { %985 = vst [vmem:[%s1406_s17] sm:$0xff] %v1162_v47  ;;  %v1163_v51 = vpack.c.bf16 %v924_v48, %v923_v44 }
 0x215   : > { %986 = vst [vmem:[%s1406_s17 + $0x8] sm:$0xff] %v1163_v51  ;;  %v852_v55 = vpop.f32.mrb[20].mxu1 }
 0x216   : > { %v925_v57 = vadd.f32 %v909_v52, %v852_v55  ;;  %v854_v58 = vpop.f32.mrb[21].mxu1 }
 0x217   : > { %v926_v61 = vadd.f32 %v910_v53, %v854_v58  ;;  %v856_v62 = vpop.f32.mrb[22].mxu1 }
 0x218   : > { %v927_v1 = vadd.f32 %v911_v56, %v856_v62  ;;  %v858_v2 = vpop.f32.mrb[23].mxu1 }
 0x219   : > { %v1164_v4 = vpack.c.bf16 %v926_v61, %v925_v57  ;;  %v928_v5 = vadd.f32 %v912_v59, %v858_v2 }
 0x21b   : > { %987 = vst [vmem:[%s1406_s17 + $0x10] sm:$0xff] %v1164_v4  ;;  %v1165_v8 = vpack.c.bf16 %v928_v5, %v927_v1 }
 0x21d   : > { %988 = vst [vmem:[%s1406_s17 + $0x18] sm:$0xff] %v1165_v8  ;;  %v862_v12 = vpop.f32.mrb[24].mxu1 }
 0x21e   : > { %v929_v14 = vadd.f32 %v913_v9, %v862_v12  ;;  %v864_v15 = vpop.f32.mrb[25].mxu1 }
 0x21f   : > { %v930_v18 = vadd.f32 %v914_v10, %v864_v15  ;;  %v866_v0 = vpop.f32.mrb[26].mxu1 }
 0x220   : > { %v931_v27 = vadd.f32 %v915_v13, %v866_v0  ;;  %v868_v29 = vpop.f32.mrb[27].mxu1 }
 0x221   : > { %v1166_v31 = vpack.c.bf16 %v930_v18, %v929_v14  ;;  %v932_v19 = vadd.f32 %v916_v16, %v868_v29 }
 0x223   : > { %989 = vst [vmem:[%s1406_s17 + $0x20] sm:$0xff] %v1166_v31  ;;  %v1167_v33 = vpack.c.bf16 %v932_v19, %v931_v27 }
 0x225   : > { %990 = vst [vmem:[%s1406_s17 + $0x28] sm:$0xff] %v1167_v33  ;;  %v872_v34 = vpop.f32.mrb[28].mxu1 }
 0x226   : > { %v933_v36 = vadd.f32 %v917_v21, %v872_v34  ;;  %v874_v37 = vpop.f32.mrb[29].mxu1 }
 0x227   : > { %v934_v39 = vadd.f32 %v918_v22, %v874_v37  ;;  %v876_v40 = vpop.f32.mrb[30].mxu1 }
 0x228   : > { %v935_v41 = vadd.f32 %v919_v35, %v876_v40  ;;  %v878_v42 = vpop.f32.mrb[31].mxu1 }
 0x229   : > { %v1168_v43 = vpack.c.bf16 %v934_v39, %v933_v36  ;;  %v936_v44 = vadd.f32 %v920_v38, %v878_v42 }
 0x22b   : > { %991 = vst [vmem:[%s1406_s17 + $0x30] sm:$0xff] %v1168_v43  ;;  %v1169_v45 = vpack.c.bf16 %v936_v44, %v935_v41 }
 0x22d   : > { %992 = vst [vmem:[%s1406_s17 + $0x38] sm:$0xff] %v1169_v45 }
 0x22e PF: > { %s15_s20 = sadd.s32 1, %s1245_s20   ;;  %s1440_s18 = smov %s1241_s19 }
 0x22f   : > { %p12_p5 = scmp.ge.s32.totalorder %s15_s20, 4   ;;  %s1441_s19 = smov %s1443_s21 }
 0x231   :  { %14 = sbr.rel (!%p12_p5) target bundleno = 2 (0x2), region = 73 }

</bundles_post_ra>
